<compile_context>
chip_gen: v6e
topology: v6e:2x2x1
jax: 0.10.0
libtpu: 0.0.40
codegen_flags: <defaults>
</compile_context>

<pallas_src>
import math

import jax
import jax.numpy as jnp
from jax.experimental import pallas as pl
from jax.experimental.pallas import tpu as pltpu

LN_EPS = 1e-5
NEG_INF = -1e30
# MXU operand dtype (accumulation is always f32 via preferred_element_type).
# Set to jnp.float32 if full-precision matmuls are required.
MATMUL_DTYPE = jnp.bfloat16


def _layernorm(x, w_row):
    # x: [T, C] f32, w_row: [1, C]  (weight-only LayerNorm, bias=False)
    mu = jnp.mean(x, axis=-1, keepdims=True)
    var = jnp.mean(jnp.square(x - mu), axis=-1, keepdims=True)
    return (x - mu) * jax.lax.rsqrt(var + LN_EPS) * w_row


def _gelu_tanh(x):
    c = math.sqrt(2.0 / math.pi)
    return 0.5 * x * (1.0 + jnp.tanh(c * (x + 0.044715 * x * x * x)))


# ----------------------------------------------------------------------------
# Whole decoder stack: grid = (batch_row, layer).  Residual stream in scratch.
# ----------------------------------------------------------------------------
def _stack_kernel(x_ref, ln1_ref, wqkv_ref, wproj_ref, ln2_ref, wfc_ref,
                  wfp_ref, o_ref, x_vmem, mask_vmem):
    layer = pl.program_id(1)
    n_layers = pl.num_programs(1)
    T, C = x_vmem.shape
    H = wqkv_ref.shape[0]
    hd = C // H
    scale = 1.0 / math.sqrt(hd)

    @pl.when(layer == 0)
    def _init():
        # residual stream stays VMEM-resident across all layers of this row
        x_vmem[...] = x_ref[...].astype(jnp.float32)
        # additive causal mask built once per batch row (hoisted out of layers)
        row = jax.lax.broadcasted_iota(jnp.int32, (T, T), 0)
        col = jax.lax.broadcasted_iota(jnp.int32, (T, T), 1)
        mask_vmem[...] = jnp.where(col <= row, 0.0, NEG_INF).astype(jnp.float32)

    x = x_vmem[...]                                            # (T, C) f32

    # ---------------- attention (all heads batched, no per-head loop) -------
    xn = _layernorm(x, ln1_ref[...].astype(jnp.float32))
    xb = jnp.broadcast_to(xn.astype(MATMUL_DTYPE)[None], (H, T, C))
    # (H,T,C) @ (H,C,3hd) -> (H,T,3hd): one batched MXU contraction for q,k,v
    qkv = jnp.einsum('htc,hcd->htd', xb, wqkv_ref[...].astype(MATMUL_DTYPE),
                     preferred_element_type=jnp.float32)
    q = qkv[:, :, 0 * hd:1 * hd]
    k = qkv[:, :, 1 * hd:2 * hd]
    v = qkv[:, :, 2 * hd:3 * hd]

    att = jnp.einsum('hqd,hkd->hqk', q.astype(MATMUL_DTYPE),
                     k.astype(MATMUL_DTYPE),
                     preferred_element_type=jnp.float32) * scale
    att = att + mask_vmem[...][None]
    att = att - jnp.max(att, axis=-1, keepdims=True)
    p = jnp.exp(att)                                           # f32 on the VPU
    p = p * pl.reciprocal(jnp.sum(p, axis=-1, keepdims=True), approx=True)
    y = jnp.einsum('hqk,hkd->hqd', p.astype(MATMUL_DTYPE),
                   v.astype(MATMUL_DTYPE),
                   preferred_element_type=jnp.float32)         # (H, T, hd)
    # output projection, head-blocked weights: proj = sum_h y_h @ Wproj_h
    proj_h = jnp.einsum('htd,hdc->htc', y.astype(MATMUL_DTYPE),
                        wproj_ref[...].astype(MATMUL_DTYPE),
                        preferred_element_type=jnp.float32)    # (H, T, C)
    x = x + jnp.sum(proj_h, axis=0)

    # ---------------- MLP (plain 2-D MXU matmuls, M = T) --------------------
    xn2 = _layernorm(x, ln2_ref[...].astype(jnp.float32))
    h1 = jnp.dot(xn2.astype(MATMUL_DTYPE), wfc_ref[...].astype(MATMUL_DTYPE),
                 preferred_element_type=jnp.float32)           # (T, F)
    h1 = _gelu_tanh(h1)
    h2 = jnp.dot(h1.astype(MATMUL_DTYPE), wfp_ref[...].astype(MATMUL_DTYPE),
                 preferred_element_type=jnp.float32)           # (T, C)
    x_vmem[...] = x + h2

    @pl.when(layer == n_layers - 1)
    def _finalize():
        o_ref[...] = x_vmem[...].astype(o_ref.dtype)


def mg_blocks(x, stacked):
    B, T, C = x.shape
    L, H, _, three_hd = stacked['wqkv'].shape
    hd = three_hd // 3
    F = stacked['wfc'].shape[-1]

    def wspec(shape):
        # one layer slab per grid step, streamed/double-buffered by Pallas
        return pl.BlockSpec((None,) + shape,
                            lambda b, l: (l,) + (0,) * len(shape))

    in_specs = [
        pl.BlockSpec((None, T, C), lambda b, l: (b, 0, 0)),    # x (per batch row)
        wspec((1, C)),                                         # ln1_w   (L,1,C)
        wspec((H, C, 3 * hd)),                                 # wqkv_hb (L,H,C,3hd)
        wspec((H, hd, C)),                                     # wproj_hb(L,H,hd,C)
        wspec((1, C)),                                         # ln2_w   (L,1,C)
        wspec((C, F)),                                         # wfc     (L,C,F)
        wspec((F, C)),                                         # wfc_proj(L,F,C)
    ]
    out_specs = pl.BlockSpec((None, T, C), lambda b, l: (b, 0, 0))

    return pl.pallas_call(
        _stack_kernel,
        out_shape=jax.ShapeDtypeStruct((B, T, C), x.dtype),
        grid_spec=pltpu.PrefetchScalarGridSpec(
            num_scalar_prefetch=0,
            grid=(B, L),
            in_specs=in_specs,
            out_specs=out_specs,
            scratch_shapes=[pltpu.VMEM((T, C), jnp.float32),   # residual stream
                            pltpu.VMEM((T, T), jnp.float32)],  # causal mask
        ),
        compiler_params=pltpu.CompilerParams(
            # batch rows are independent -> shard across TensorCores (v7x);
            # layer axis carries the residual stream in scratch -> sequential.
            dimension_semantics=("parallel", "arbitrary"),
            # per-step footprint = double-buffered per-layer weight slabs (bf16)
            # + (T,C)/(T,T)/(H,T,*) f32 intermediates; 32 MiB is safe on
            # v5e/v6e/v7x for this module's sizes.
            vmem_limit_bytes=32 * 1024 * 1024,
        ),
    )(x, stacked['ln1_w'], stacked['wqkv'], stacked['wproj'],
      stacked['ln2_w'], stacked['wfc'], stacked['wfc_proj'])


# ----------------------------------------------------------------------------
# Final LayerNorm + tied lm_head on the last token, vocab tiled by the grid.
# ----------------------------------------------------------------------------
def _head_kernel(x_ref, lnw_ref, wte_ref, o_ref):
    x = x_ref[...].astype(jnp.float32)                         # (B, C)
    mu = jnp.mean(x, axis=-1, keepdims=True)
    var = jnp.mean(jnp.square(x - mu), axis=-1, keepdims=True)
    xn = (x - mu) * jax.lax.rsqrt(var + LN_EPS) * lnw_ref[...].astype(jnp.float32)
    # tied lm_head: logits = xn @ wte^T, contracted in place (no host transpose)
    logits = jax.lax.dot_general(
        xn.astype(MATMUL_DTYPE), wte_ref[...].astype(MATMUL_DTYPE),
        dimension_numbers=(((1,), (1,)), ((), ())),
        preferred_element_type=jnp.float32)
    o_ref[...] = logits.astype(o_ref.dtype)


def _vocab_tile(v_size):
    if v_size % 128 != 0:
        return v_size          # small / unaligned vocab: single full-width tile
    for t in (512, 256, 128):
        if v_size % t == 0:
            return t
    return v_size


def mg_head(x_last, f_ln_w, wte):
    B, C = x_last.shape
    V = wte.shape[0]
    tn = _vocab_tile(V)
    return pl.pallas_call(
        _head_kernel,
        out_shape=jax.ShapeDtypeStruct((B, V), x_last.dtype),
        grid_spec=pltpu.PrefetchScalarGridSpec(
            num_scalar_prefetch=0,
            grid=(V // tn,),
            in_specs=[pl.BlockSpec((B, C), lambda j: (0, 0)),
                      pl.BlockSpec((1, C), lambda j: (0, 0)),
                      pl.BlockSpec((tn, C), lambda j: (j, 0))],   # weight slab
            out_specs=pl.BlockSpec((B, tn), lambda j: (0, j)),    # lane-dense tile
        ),
        compiler_params=pltpu.CompilerParams(
            dimension_semantics=("parallel",),
        ),
    )(x_last, f_ln_w, wte)


# ----------------------------------------------------------------------------
# Parameters (stacked / head-blocked once at init; matmul weights in bf16).
# ----------------------------------------------------------------------------
def init_params(key, n_embd, h_dim, n_block, v_size, max_seq_len, ff_dim):
    C = n_embd
    H = n_embd // h_dim
    hd = h_dim
    std = 0.02
    proj_std = 0.02 / math.sqrt(2 * n_block)
    keys = jax.random.split(key, 2 + 4 * n_block)

    wte = std * jax.random.normal(keys[0], (v_size, C), jnp.float32)
    wpe = std * jax.random.normal(keys[1], (max_seq_len, C), jnp.float32)

    wqkv_l, wproj_l, wfc_l, wfp_l = [], [], [], []
    for b in range(n_block):
        k0, k1, k2, k3 = keys[2 + 4 * b: 6 + 4 * b]
        # nn.Linear weights are (out, in); build the x @ W orientation (in, out)
        wqkv = (std * jax.random.normal(k0, (3 * C, C), jnp.float32)).T       # (C, 3C)
        wproj = (proj_std * jax.random.normal(k1, (C, C), jnp.float32)).T     # (C, C)
        wfc = (std * jax.random.normal(k2, (ff_dim, C), jnp.float32)).T       # (C, F)
        wfp = (proj_std * jax.random.normal(k3, (C, ff_dim), jnp.float32)).T  # (F, C)

        # head-blocked layouts (one-time host work):
        #   wqkv_hb[h] = [Wq_h | Wk_h | Wv_h]  : (C, 3*hd)
        #   wproj_hb[h] = rows of Wproj fed by head h : (hd, C)
        wq = wqkv[:, 0 * C:1 * C].reshape(C, H, hd)
        wk = wqkv[:, 1 * C:2 * C].reshape(C, H, hd)
        wv = wqkv[:, 2 * C:3 * C].reshape(C, H, hd)
        wqkv_hb = jnp.transpose(jnp.concatenate([wq, wk, wv], axis=-1), (1, 0, 2))
        wproj_hb = wproj.reshape(H, hd, C)

        wqkv_l.append(wqkv_hb)
        wproj_l.append(wproj_hb)
        wfc_l.append(wfc)
        wfp_l.append(wfp)

    stacked = {
        'ln1_w': jnp.ones((n_block, 1, C), jnp.float32),
        'wqkv': jnp.stack(wqkv_l).astype(MATMUL_DTYPE),        # (L, H, C, 3hd)
        'wproj': jnp.stack(wproj_l).astype(MATMUL_DTYPE),      # (L, H, hd, C)
        'ln2_w': jnp.ones((n_block, 1, C), jnp.float32),
        'wfc': jnp.stack(wfc_l).astype(MATMUL_DTYPE),          # (L, C, F)
        'wfc_proj': jnp.stack(wfp_l).astype(MATMUL_DTYPE),     # (L, F, C)
    }
    return {'wte': wte, 'wpe': wpe,
            'f_ln_w': jnp.ones((1, C), jnp.float32),
            'blocks': stacked}


def mg_transformer_forward(params, idx, max_seq_len):
    B, T = idx.shape
    assert T <= max_seq_len
    # embedding gathers are plain-JAX glue; dropout p=0 -> identity
    tok_emb = params['wte'][idx]                  # (B, T, C)
    pos_emb = params['wpe'][:T]                   # (T, C)
    x = tok_emb + pos_emb[None]
    x = mg_blocks(x, params['blocks'])            # full decoder stack, one call
    # targets=None path: f_ln + tied lm_head on the last token only
    logits_last = mg_head(x[:, -1, :], params['f_ln_w'], params['wte'])   # (B, V)
    return logits_last[:, None, :], None          # (B, 1, V), loss=None


if __name__ == "__main__":
    # small config consistent with the module
    n_embd = 32
    h_dim = 8
    n_head = n_embd // h_dim       # 4
    n_block = 2
    v_size = 64
    b_size = 16
    max_seq_len = 16
    ff_dim = 4 * n_embd            # 128
    B, T = 2, 8

    key = jax.random.PRNGKey(0)
    k_param, k_idx = jax.random.split(key)
    params = init_params(k_param, n_embd, h_dim, n_block, v_size, max_seq_len, ff_dim)
    idx = jax.random.randint(k_idx, (B, T), 0, v_size, dtype=jnp.int32)

    logits, loss = mg_transformer_forward(params, idx, max_seq_len)
    logits = jax.block_until_ready(logits)
    assert logits.shape == (B, 1, v_size)
    assert loss is None
    print("KERNEL_OK")
</pallas_src>

<mosaic_0001>
module attributes {stable_mosaic.version = 11 : i64} {
  func.func @_stack_kernel(%arg0: i32, %arg1: i32, %arg2: memref<1x8x32xf32, #tpu.memory_space<vmem>>, %arg3: memref<1x1x32xf32, #tpu.memory_space<vmem>>, %arg4: memref<1x4x32x24xbf16, #tpu.memory_space<vmem>>, %arg5: memref<1x4x8x32xbf16, #tpu.memory_space<vmem>>, %arg6: memref<1x1x32xf32, #tpu.memory_space<vmem>>, %arg7: memref<1x32x128xbf16, #tpu.memory_space<vmem>>, %arg8: memref<1x128x32xbf16, #tpu.memory_space<vmem>>, %arg9: memref<1x8x32xf32, #tpu.memory_space<vmem>>, %arg10: memref<8x32xf32, #tpu.memory_space<vmem>>, %arg11: memref<8x8xf32, #tpu.memory_space<vmem>>) attributes {dimension_semantics = [#tpu.dimension_semantics<parallel>, #tpu.dimension_semantics<arbitrary>], iteration_bounds = array<i64: 2, 2>, scalar_prefetch = 0 : i64, scratch_operands = 2 : i64, tpu.core_type = #tpu.core_type<tc>, window_params = [{transform_indices = @transform_0, window_bounds = array<i64: 1, 8, 32>}, {transform_indices = @transform_1, window_bounds = array<i64: 1, 1, 32>}, {transform_indices = @transform_2, window_bounds = array<i64: 1, 4, 32, 24>}, {transform_indices = @transform_3, window_bounds = array<i64: 1, 4, 8, 32>}, {transform_indices = @transform_4, window_bounds = array<i64: 1, 1, 32>}, {transform_indices = @transform_5, window_bounds = array<i64: 1, 32, 128>}, {transform_indices = @transform_6, window_bounds = array<i64: 1, 128, 32>}, {transform_indices = @transform_7, window_bounds = array<i64: 1, 8, 32>}]} {
    %c0_i32 = arith.constant 0 : i32
    %0 = arith.cmpi eq, %arg1, %c0_i32 : i32
    %1 = arith.extui %0 : i1 to i32
    %c0_i32_0 = arith.constant 0 : i32
    %2 = arith.cmpi ne, %1, %c0_i32_0 : i32
    scf.if %2 {
      %c0_50 = arith.constant 0 : index
      %c0_51 = arith.constant 0 : index
      %c0_52 = arith.constant 0 : index
      %112 = vector.load %arg2[%c0_50, %c0_51, %c0_52] : memref<1x8x32xf32, #tpu.memory_space<vmem>>, vector<1x8x32xf32>
      %113 = vector.shape_cast %112 : vector<1x8x32xf32> to vector<8x32xf32>
      %c0_53 = arith.constant 0 : index
      %c0_54 = arith.constant 0 : index
      %114 = vector.load %arg10[%c0_53, %c0_54] : memref<8x32xf32, #tpu.memory_space<vmem>>, vector<8x32xf32>
      tpu.vector_store %arg10[%c0_53, %c0_54], %113 {strides = array<i32>} : memref<8x32xf32, #tpu.memory_space<vmem>>, vector<8x32xf32>,
      %115 = tpu.iota {dimensions = array<i32: 0>} : vector<8x8xi32>
      %116 = tpu.iota {dimensions = array<i32: 1>} : vector<8x8xi32>
      %117 = arith.cmpi sle, %116, %115 : vector<8x8xi32>
      %cst_55 = arith.constant 0.000000e+00 : f32
      %cst_56 = arith.constant -1.000000e+30 : f32
      %118 = vector.broadcast %cst_55 : f32 to vector<8x8xf32>
      %119 = vector.broadcast %cst_56 : f32 to vector<8x8xf32>
      %120 = arith.select %117, %118, %119 : vector<8x8xi1>, vector<8x8xf32>
      %c0_57 = arith.constant 0 : index
      %c0_58 = arith.constant 0 : index
      %121 = vector.load %arg11[%c0_57, %c0_58] : memref<8x8xf32, #tpu.memory_space<vmem>>, vector<8x8xf32>
      tpu.vector_store %arg11[%c0_57, %c0_58], %120 {strides = array<i32>} : memref<8x8xf32, #tpu.memory_space<vmem>>, vector<8x8xf32>,
    } else {
    }
    %c0 = arith.constant 0 : index
    %c0_1 = arith.constant 0 : index
    %3 = vector.load %arg10[%c0, %c0_1] : memref<8x32xf32, #tpu.memory_space<vmem>>, vector<8x32xf32>
    %c0_2 = arith.constant 0 : index
    %c0_3 = arith.constant 0 : index
    %c0_4 = arith.constant 0 : index
    %4 = vector.load %arg3[%c0_2, %c0_3, %c0_4] : memref<1x1x32xf32, #tpu.memory_space<vmem>>, vector<1x1x32xf32>
    %5 = vector.shape_cast %4 : vector<1x1x32xf32> to vector<1x32xf32>
    %cst = arith.constant dense<0.000000e+00> : vector<8xf32>
    %6 = vector.multi_reduction <add>, %3, %cst [1] : vector<8x32xf32> to vector<8xf32>
    %7 = vector.shape_cast %6 : vector<8xf32> to vector<8x1xf32>
    %cst_5 = arith.constant 3.200000e+01 : f32
    %8 = vector.broadcast %cst_5 : f32 to vector<8x1xf32>
    %9 = arith.divf %7, %8 : vector<8x1xf32>
    %10 = vector.broadcast %9 : vector<8x1xf32> to vector<8x32xf32>
    %11 = arith.subf %3, %10 : vector<8x32xf32>
    %12 = arith.mulf %11, %11 : vector<8x32xf32>
    %cst_6 = arith.constant dense<0.000000e+00> : vector<8xf32>
    %13 = vector.multi_reduction <add>, %12, %cst_6 [1] : vector<8x32xf32> to vector<8xf32>
    %14 = vector.shape_cast %13 : vector<8xf32> to vector<8x1xf32>
    %cst_7 = arith.constant 3.200000e+01 : f32
    %15 = vector.broadcast %cst_7 : f32 to vector<8x1xf32>
    %16 = arith.divf %14, %15 : vector<8x1xf32>
    %17 = vector.broadcast %9 : vector<8x1xf32> to vector<8x32xf32>
    %18 = arith.subf %3, %17 : vector<8x32xf32>
    %cst_8 = arith.constant 9.99999974E-6 : f32
    %19 = vector.broadcast %cst_8 : f32 to vector<8x1xf32>
    %20 = arith.addf %16, %19 : vector<8x1xf32>
    %21 = math.rsqrt %20 : vector<8x1xf32>
    %22 = vector.broadcast %21 : vector<8x1xf32> to vector<8x32xf32>
    %23 = arith.mulf %18, %22 : vector<8x32xf32>
    %24 = vector.broadcast %5 : vector<1x32xf32> to vector<8x32xf32>
    %25 = arith.mulf %23, %24 : vector<8x32xf32>
    %26 = arith.truncf %25 : vector<8x32xf32> to vector<8x32xbf16>
    %27 = vector.shape_cast %26 : vector<8x32xbf16> to vector<1x8x32xbf16>
    %28 = vector.shape_cast %27 : vector<1x8x32xbf16> to vector<1x8x32xbf16>
    %29 = vector.broadcast %28 : vector<1x8x32xbf16> to vector<4x8x32xbf16>
    %c0_9 = arith.constant 0 : index
    %c0_10 = arith.constant 0 : index
    %c0_11 = arith.constant 0 : index
    %c0_12 = arith.constant 0 : index
    %30 = vector.load %arg4[%c0_9, %c0_10, %c0_11, %c0_12] : memref<1x4x32x24xbf16, #tpu.memory_space<vmem>>, vector<1x4x32x24xbf16>
    %31 = vector.shape_cast %30 : vector<1x4x32x24xbf16> to vector<4x32x24xbf16>
    "tpu.trace_start"() <{level = 10 : i32, message = "htc,hcd->htd"}> : () -> ()
    %cst_13 = arith.constant dense<0.000000e+00> : vector<4x8x24xf32>
    %32 = tpu.matmul %29, %31, %cst_13 {dimension_numbers = #tpu.dot_dimension_numbers<[2], [1], [1], [2], [0, 0, 0, 1, 1, 2], [0], [0]>} : vector<4x8x32xbf16>, vector<4x32x24xbf16>, vector<4x8x24xf32> -> vector<4x8x24xf32>
    "tpu.trace_stop"() : () -> ()
    %33 = vector.extract_strided_slice %32 {offsets = [0, 0, 0], sizes = [4, 8, 8], strides = [1, 1, 1]} : vector<4x8x24xf32> to vector<4x8x8xf32>
    %34 = vector.extract_strided_slice %32 {offsets = [0, 0, 8], sizes = [4, 8, 8], strides = [1, 1, 1]} : vector<4x8x24xf32> to vector<4x8x8xf32>
    %35 = vector.extract_strided_slice %32 {offsets = [0, 0, 16], sizes = [4, 8, 8], strides = [1, 1, 1]} : vector<4x8x24xf32> to vector<4x8x8xf32>
    %36 = arith.truncf %33 : vector<4x8x8xf32> to vector<4x8x8xbf16>
    %37 = arith.truncf %34 : vector<4x8x8xf32> to vector<4x8x8xbf16>
    "tpu.trace_start"() <{level = 10 : i32, message = "hqd,hkd->hqk"}> : () -> ()
    %cst_14 = arith.constant dense<0.000000e+00> : vector<4x8x8xf32>
    %38 = tpu.matmul %36, %37, %cst_14 {dimension_numbers = #tpu.dot_dimension_numbers<[2], [2], [1], [1], [0, 0, 0, 1, 1, 1], [0], [0]>} : vector<4x8x8xbf16>, vector<4x8x8xbf16>, vector<4x8x8xf32> -> vector<4x8x8xf32>
    "tpu.trace_stop"() : () -> ()
    %cst_15 = arith.constant 0.353553385 : f32
    %39 = vector.broadcast %cst_15 : f32 to vector<4x8x8xf32>
    %40 = arith.mulf %38, %39 : vector<4x8x8xf32>
    %c0_16 = arith.constant 0 : index
    %c0_17 = arith.constant 0 : index
    %41 = vector.load %arg11[%c0_16, %c0_17] : memref<8x8xf32, #tpu.memory_space<vmem>>, vector<8x8xf32>
    %42 = vector.shape_cast %41 : vector<8x8xf32> to vector<1x8x8xf32>
    %43 = vector.broadcast %42 : vector<1x8x8xf32> to vector<4x8x8xf32>
    %44 = arith.addf %40, %43 : vector<4x8x8xf32>
    %cst_18 = arith.constant dense<0xFF800000> : vector<4x8xf32>
    %45 = vector.multi_reduction <maximumf>, %44, %cst_18 [2] : vector<4x8x8xf32> to vector<4x8xf32>
    %46 = vector.shape_cast %45 : vector<4x8xf32> to vector<4x8x1xf32>
    %47 = vector.broadcast %46 : vector<4x8x1xf32> to vector<4x8x8xf32>
    %48 = arith.subf %44, %47 : vector<4x8x8xf32>
    %49 = math.exp %48 : vector<4x8x8xf32>
    %cst_19 = arith.constant dense<0.000000e+00> : vector<4x8xf32>
    %50 = vector.multi_reduction <add>, %49, %cst_19 [2] : vector<4x8x8xf32> to vector<4x8xf32>
    %51 = vector.shape_cast %50 : vector<4x8xf32> to vector<4x8x1xf32>
    %52 = tpu.reciprocal %51 {approx = true} : vector<4x8x1xf32> -> vector<4x8x1xf32>
    %53 = vector.broadcast %52 : vector<4x8x1xf32> to vector<4x8x8xf32>
    %54 = arith.mulf %49, %53 : vector<4x8x8xf32>
    %55 = arith.truncf %54 : vector<4x8x8xf32> to vector<4x8x8xbf16>
    %56 = arith.truncf %35 : vector<4x8x8xf32> to vector<4x8x8xbf16>
    "tpu.trace_start"() <{level = 10 : i32, message = "hqk,hkd->hqd"}> : () -> ()
    %cst_20 = arith.constant dense<0.000000e+00> : vector<4x8x8xf32>
    %57 = tpu.matmul %55, %56, %cst_20 {dimension_numbers = #tpu.dot_dimension_numbers<[2], [1], [1], [2], [0, 0, 0, 1, 1, 2], [0], [0]>} : vector<4x8x8xbf16>, vector<4x8x8xbf16>, vector<4x8x8xf32> -> vector<4x8x8xf32>
    "tpu.trace_stop"() : () -> ()
    %58 = arith.truncf %57 : vector<4x8x8xf32> to vector<4x8x8xbf16>
    %c0_21 = arith.constant 0 : index
    %c0_22 = arith.constant 0 : index
    %c0_23 = arith.constant 0 : index
    %c0_24 = arith.constant 0 : index
    %59 = vector.load %arg5[%c0_21, %c0_22, %c0_23, %c0_24] : memref<1x4x8x32xbf16, #tpu.memory_space<vmem>>, vector<1x4x8x32xbf16>
    %60 = vector.shape_cast %59 : vector<1x4x8x32xbf16> to vector<4x8x32xbf16>
    "tpu.trace_start"() <{level = 10 : i32, message = "htd,hdc->htc"}> : () -> ()
    %cst_25 = arith.constant dense<0.000000e+00> : vector<4x8x32xf32>
    %61 = tpu.matmul %58, %60, %cst_25 {dimension_numbers = #tpu.dot_dimension_numbers<[2], [1], [1], [2], [0, 0, 0, 1, 1, 2], [0], [0]>} : vector<4x8x8xbf16>, vector<4x8x32xbf16>, vector<4x8x32xf32> -> vector<4x8x32xf32>
    "tpu.trace_stop"() : () -> ()
    %cst_26 = arith.constant dense<0.000000e+00> : vector<8x32xf32>
    %62 = vector.multi_reduction <add>, %61, %cst_26 [0] : vector<4x8x32xf32> to vector<8x32xf32>
    %63 = arith.addf %3, %62 : vector<8x32xf32>
    %c0_27 = arith.constant 0 : index
    %c0_28 = arith.constant 0 : index
    %c0_29 = arith.constant 0 : index
    %64 = vector.load %arg6[%c0_27, %c0_28, %c0_29] : memref<1x1x32xf32, #tpu.memory_space<vmem>>, vector<1x1x32xf32>
    %65 = vector.shape_cast %64 : vector<1x1x32xf32> to vector<1x32xf32>
    %cst_30 = arith.constant dense<0.000000e+00> : vector<8xf32>
    %66 = vector.multi_reduction <add>, %63, %cst_30 [1] : vector<8x32xf32> to vector<8xf32>
    %67 = vector.shape_cast %66 : vector<8xf32> to vector<8x1xf32>
    %cst_31 = arith.constant 3.200000e+01 : f32
    %68 = vector.broadcast %cst_31 : f32 to vector<8x1xf32>
    %69 = arith.divf %67, %68 : vector<8x1xf32>
    %70 = vector.broadcast %69 : vector<8x1xf32> to vector<8x32xf32>
    %71 = arith.subf %63, %70 : vector<8x32xf32>
    %72 = arith.mulf %71, %71 : vector<8x32xf32>
    %cst_32 = arith.constant dense<0.000000e+00> : vector<8xf32>
    %73 = vector.multi_reduction <add>, %72, %cst_32 [1] : vector<8x32xf32> to vector<8xf32>
    %74 = vector.shape_cast %73 : vector<8xf32> to vector<8x1xf32>
    %cst_33 = arith.constant 3.200000e+01 : f32
    %75 = vector.broadcast %cst_33 : f32 to vector<8x1xf32>
    %76 = arith.divf %74, %75 : vector<8x1xf32>
    %77 = vector.broadcast %69 : vector<8x1xf32> to vector<8x32xf32>
    %78 = arith.subf %63, %77 : vector<8x32xf32>
    %cst_34 = arith.constant 9.99999974E-6 : f32
    %79 = vector.broadcast %cst_34 : f32 to vector<8x1xf32>
    %80 = arith.addf %76, %79 : vector<8x1xf32>
    %81 = math.rsqrt %80 : vector<8x1xf32>
    %82 = vector.broadcast %81 : vector<8x1xf32> to vector<8x32xf32>
    %83 = arith.mulf %78, %82 : vector<8x32xf32>
    %84 = vector.broadcast %65 : vector<1x32xf32> to vector<8x32xf32>
    %85 = arith.mulf %83, %84 : vector<8x32xf32>
    %86 = arith.truncf %85 : vector<8x32xf32> to vector<8x32xbf16>
    %c0_35 = arith.constant 0 : index
    %c0_36 = arith.constant 0 : index
    %c0_37 = arith.constant 0 : index
    %87 = vector.load %arg7[%c0_35, %c0_36, %c0_37] : memref<1x32x128xbf16, #tpu.memory_space<vmem>>, vector<1x32x128xbf16>
    %88 = vector.shape_cast %87 : vector<1x32x128xbf16> to vector<32x128xbf16>
    %cst_38 = arith.constant dense<0.000000e+00> : vector<8x128xf32>
    %89 = tpu.matmul %86, %88, %cst_38 {dimension_numbers = #tpu.dot_dimension_numbers<[1], [0], [0], [1], [0, 0, 1, 1], [], []>} : vector<8x32xbf16>, vector<32x128xbf16>, vector<8x128xf32> -> vector<8x128xf32>
    %cst_39 = arith.constant 5.000000e-01 : f32
    %90 = vector.broadcast %cst_39 : f32 to vector<8x128xf32>
    %91 = arith.mulf %90, %89 : vector<8x128xf32>
    %cst_40 = arith.constant 4.471500e-02 : f32
    %92 = vector.broadcast %cst_40 : f32 to vector<8x128xf32>
    %93 = arith.mulf %92, %89 : vector<8x128xf32>
    %94 = arith.mulf %93, %89 : vector<8x128xf32>
    %95 = arith.mulf %94, %89 : vector<8x128xf32>
    %96 = arith.addf %89, %95 : vector<8x128xf32>
    %cst_41 = arith.constant 0.797884583 : f32
    %97 = vector.broadcast %cst_41 : f32 to vector<8x128xf32>
    %98 = arith.mulf %97, %96 : vector<8x128xf32>
    %99 = math.tanh %98 : vector<8x128xf32>
    %cst_42 = arith.constant 1.000000e+00 : f32
    %100 = vector.broadcast %cst_42 : f32 to vector<8x128xf32>
    %101 = arith.addf %100, %99 : vector<8x128xf32>
    %102 = arith.mulf %91, %101 : vector<8x128xf32>
    %103 = arith.truncf %102 : vector<8x128xf32> to vector<8x128xbf16>
    %c0_43 = arith.constant 0 : index
    %c0_44 = arith.constant 0 : index
    %c0_45 = arith.constant 0 : index
    %104 = vector.load %arg8[%c0_43, %c0_44, %c0_45] : memref<1x128x32xbf16, #tpu.memory_space<vmem>>, vector<1x128x32xbf16>
    %105 = vector.shape_cast %104 : vector<1x128x32xbf16> to vector<128x32xbf16>
    %cst_46 = arith.constant dense<0.000000e+00> : vector<8x32xf32>
    %106 = tpu.matmul %103, %105, %cst_46 {dimension_numbers = #tpu.dot_dimension_numbers<[1], [0], [0], [1], [0, 0, 1, 1], [], []>} : vector<8x128xbf16>, vector<128x32xbf16>, vector<8x32xf32> -> vector<8x32xf32>
    %107 = arith.addf %63, %106 : vector<8x32xf32>
    %c0_47 = arith.constant 0 : index
    %c0_48 = arith.constant 0 : index
    %108 = vector.load %arg10[%c0_47, %c0_48] : memref<8x32xf32, #tpu.memory_space<vmem>>, vector<8x32xf32>
    tpu.vector_store %arg10[%c0_47, %c0_48], %107 {strides = array<i32>} : memref<8x32xf32, #tpu.memory_space<vmem>>, vector<8x32xf32>,
    %c1_i32 = arith.constant 1 : i32
    %109 = arith.cmpi eq, %arg1, %c1_i32 : i32
    %110 = arith.extui %109 : i1 to i32
    %c0_i32_49 = arith.constant 0 : i32
    %111 = arith.cmpi ne, %110, %c0_i32_49 : i32
    scf.if %111 {
      %c0_50 = arith.constant 0 : index
      %c0_51 = arith.constant 0 : index
      %112 = vector.load %arg10[%c0_50, %c0_51] : memref<8x32xf32, #tpu.memory_space<vmem>>, vector<8x32xf32>
      %c0_52 = arith.constant 0 : index
      %c0_53 = arith.constant 0 : index
      %c0_54 = arith.constant 0 : index
      %113 = vector.load %arg9[%c0_52, %c0_53, %c0_54] : memref<1x8x32xf32, #tpu.memory_space<vmem>>, vector<1x8x32xf32>
      %114 = vector.shape_cast %113 : vector<1x8x32xf32> to vector<8x32xf32>
      %115 = vector.shape_cast %112 : vector<8x32xf32> to vector<1x8x32xf32>
      tpu.vector_store %arg9[%c0_52, %c0_53, %c0_54], %115 {strides = array<i32>} : memref<1x8x32xf32, #tpu.memory_space<vmem>>, vector<1x8x32xf32>,
    } else {
    }
    return
  }
  func.func @transform_0(%arg0: i32, %arg1: i32) -> (i32, i32, i32) {
    %c0_i32 = arith.constant 0 : i32
    %c0_i32_0 = arith.constant 0 : i32
    %c0_i32_1 = arith.constant 0 : i32
    return %arg0, %c0_i32, %c0_i32_0 : i32, i32, i32
  }
  func.func @transform_1(%arg0: i32, %arg1: i32) -> (i32, i32, i32) {
    %c0_i32 = arith.constant 0 : i32
    %c0_i32_0 = arith.constant 0 : i32
    %c0_i32_1 = arith.constant 0 : i32
    return %arg1, %c0_i32, %c0_i32_0 : i32, i32, i32
  }
  func.func @transform_2(%arg0: i32, %arg1: i32) -> (i32, i32, i32, i32) {
    %c0_i32 = arith.constant 0 : i32
    %c0_i32_0 = arith.constant 0 : i32
    %c0_i32_1 = arith.constant 0 : i32
    %c0_i32_2 = arith.constant 0 : i32
    return %arg1, %c0_i32, %c0_i32_0, %c0_i32_1 : i32, i32, i32, i32
  }
  func.func @transform_3(%arg0: i32, %arg1: i32) -> (i32, i32, i32, i32) {
    %c0_i32 = arith.constant 0 : i32
    %c0_i32_0 = arith.constant 0 : i32
    %c0_i32_1 = arith.constant 0 : i32
    %c0_i32_2 = arith.constant 0 : i32
    return %arg1, %c0_i32, %c0_i32_0, %c0_i32_1 : i32, i32, i32, i32
  }
  func.func @transform_4(%arg0: i32, %arg1: i32) -> (i32, i32, i32) {
    %c0_i32 = arith.constant 0 : i32
    %c0_i32_0 = arith.constant 0 : i32
    %c0_i32_1 = arith.constant 0 : i32
    return %arg1, %c0_i32, %c0_i32_0 : i32, i32, i32
  }
  func.func @transform_5(%arg0: i32, %arg1: i32) -> (i32, i32, i32) {
    %c0_i32 = arith.constant 0 : i32
    %c0_i32_0 = arith.constant 0 : i32
    %c0_i32_1 = arith.constant 0 : i32
    return %arg1, %c0_i32, %c0_i32_0 : i32, i32, i32
  }
  func.func @transform_6(%arg0: i32, %arg1: i32) -> (i32, i32, i32) {
    %c0_i32 = arith.constant 0 : i32
    %c0_i32_0 = arith.constant 0 : i32
    %c0_i32_1 = arith.constant 0 : i32
    return %arg1, %c0_i32, %c0_i32_0 : i32, i32, i32
  }
  func.func @transform_7(%arg0: i32, %arg1: i32) -> (i32, i32, i32) {
    %c0_i32 = arith.constant 0 : i32
    %c0_i32_0 = arith.constant 0 : i32
    %c0_i32_1 = arith.constant 0 : i32
    return %arg0, %c0_i32, %c0_i32_0 : i32, i32, i32
  }
}

</mosaic_0001>

<bundles_post_ra>
// kernel: tpu_custom_call.1
= control target key start
LH: loop header
LB: loop body
LE: loop exit
PB: predicated region body
PF: predicated region fallthrough
CT: control target
= control target key end

     0   :  { %12 = vsyncpa [#allocation5], 0  ;;  %s2509_s0 = inlined_call_operand.vmem [shape: f32[2,8,32], index: 0, kind: input, shape index: {}]   ;;  %s2510_s1 = inlined_call_operand.vmem [shape: f32[2,1,32], index: 1, kind: input, shape index: {}]   ;;  %s2511_s2 = inlined_call_operand.vmem [shape: bf16[2,4,32,24], index: 2, kind: input, shape index: {}]   ;;  %s2512_s3 = inlined_call_operand.vmem [shape: bf16[2,4,8,32], index: 3, kind: input, shape index: {}]   ;;  %s2513_s4 = inlined_call_operand.vmem [shape: f32[2,1,32], index: 4, kind: input, shape index: {}]   ;;  %s2514_s5 = inlined_call_operand.vmem [shape: bf16[2,32,128], index: 5, kind: input, shape index: {}]   ;;  %s2515_s6 = inlined_call_operand.vmem [shape: bf16[2,128,32], index: 6, kind: input, shape index: {}]   ;;  %s2516_s7 = inlined_call_operand.hbm [shape: f32[2,8,32], index: 7, kind: output, shape index: {}]  }
   0x1   :  { %14 = vsyncpa [#allocation5 + $0x1], 0  ;;  %s2164_s24 = smov 0   ;;  %s2166_s25 = smov 0  }
   0x2   :  { %s2168_s26 = smov 0   ;;  %s2170_s27 = smov 0  }
   0x3   :  { %s2172_s28 = smov 0   ;;  %s2174_s29 = smov 0  }
   0x4   :  { %s2176_s30 = smov 0   ;;  %s2178_s8 = smov 0  }
   0x5 LB: > { %2526 = sst [smem:[#allocation7_spill]] %s2088_s24  ;;  %s1666_s9 = sadd.s32 4294967295, %s2116_s8   ;;  %s2116_s8 = sphi %s2178_s8, %s20_s8   ;;  %s2112_s30 = sphi %s2176_s30, %s2547_s30   ;;  %s2108_s29 = sphi %s2174_s29, %s2546_s29   ;;  %s2104_s28 = sphi %s2172_s28, %s2545_s28   ;;  %s2100_s27 = sphi %s2170_s27, %s2544_s27   ;;  %s2096_s26 = sphi %s2168_s26, %s2543_s26   ;;  %s2092_s25 = sphi %s2166_s25, %s2549_s25   ;;  %s2088_s24 = sphi %s2164_s24, %s2548_s24  }
   0x6   : > { %2527 = sst [smem:[#allocation8_spill]] %s2096_s26  ;;  %s1667_s10 = sadd.s32 4294967294, %s2116_s8  }
   0x7   : > { %2528 = sst [smem:[#allocation9_spill]] %s2108_s29  ;;  %s29_s11 = sadd.s32 1, %s2108_s29 }
   0x8   : > { %2529 = sst [smem:[#allocation10_spill]] %s2112_s30  ;;  %p30_p0 = scmp.ge.s32.totalorder %s29_s11, 2 }
   0x9   : > { %2530 = sst [smem:[#allocation11_spill]] %s2116_s8  ;;  %s32_s12 = sadd.s32 1, %s2112_s30 }
   0xa   : > { %p231_p1 = scmp.ne.s32.totalorder %s2096_s26, %s2092_s25  ;;  %p232_p2 = scmp.eq.s32.totalorder %s1666_s9, 3 }
   0xb   : > { %s2551_s11 = smov (%p30_p0, %s29_s11), 0  ;;  %s2553_s12 = smov (!%p30_p0, %s32_s12), %s2112_s30 }
   0xc   : > { %2531 = sst [smem:[#allocation12_spill]] %s2551_s11  ;;  %p2213_p3 = por %p232_p2, %p231_p1 }
   0xd   : > { %p237_p4 = scmp.ne.s32.totalorder %s2092_s25, %s2088_s24  ;;  %p34_p5 = scmp.ge.s32.totalorder %s2553_s12, 2 }
   0xe   : > { %p238_p6 = scmp.eq.s32.totalorder %s1667_s10, 3  ;;  %p1670_p7 = scmp.ge.s32.totalorder %s2116_s8, 1 }
   0xf   : > { %p307_p8 = scmp.lt.s32.totalorder %s2116_s8, 5  ;;  %s2555_s12 = smov (%p34_p5, %s2553_s12), 0 }
  0x10   : > { %2533 = sst [smem:[#allocation13_spill]] %s2555_s12  ;;  %p2223_p9 = por %p238_p6, %p237_p4 }
  0x11   : > { %p308_p10 = pnand %p1670_p7, %p307_p8  ;;  %s218_s15 = ssub.s32 %s2112_s30, %s2555_s12 }
  0x12   : > { %s2534_s14 = scalar_select %p2223_p9, 1, 0 }
  0x13   : > { %s221_s16 = sadd.s32 1, %s2096_s26  ;;  %p219_p11 = scmp.eq.s32.totalorder %s218_s15, 0 }
  0x14   : > { %2535 = sst [smem:[#allocation14_spill]] %s2534_s14  ;;  %311 = sbr.rel (%p308_p10) target bundleno = 2355 (0x933), region = 48 }
  0x15   : > { %s2231_s17 = scalar_select %p219_p11, %s2096_s26, %s221_s16  }
  0x16   : > { %s2518_s18 = sand.u32 (!%p308_p10), 1, %s2092_s25   ;;  %p364_p12 = scmp.lt.s32.totalorder (!%p308_p10), %s2104_s28, 1 }
  0x17   : > { %2536 = sst [smem:[#allocation15_spill]] %s2231_s17  ;;  %s2237_s19 = sshll.u32 (!%p308_p10), %s2518_s18, 3 }
  0x18   : > { %p368_p13 = scmp.lt.s32.totalorder (!%p308_p10), %s2100_s27, 1  ;;  %s363_s30 = scalar_lea.vmem (!%p308_p10), [#allocation4], %s2237_s19 }
  0x19   : > { %s365_s20 = scalar_select %p364_p12, %s2104_s28, 1 }
  0x1a   : > { %s2242_s21 = scalar_select %p368_p13, %s2100_s27, 1 }
  0x1b   : > { %s1672_s22 = sshll.u32 %s365_s20, 3  ;;  %p1681_p0 = scmp.ne.s32.totalorder %s2100_s27, 0 }
  0x1c   : > { %s367_s10 = scalar_lea.vmem %s2509_s0, %s1672_s22  ;;  %s1724_s18 = sshll.u32 %s2242_s21, 6 }
  0x1d   : > { %s1725_s11 = sshll.u32 %s2242_s21, 4  ;;  %s2256_s17 = scalar_lea.vmem %s2511_s2, %s1724_s18 }
  0x1e   : > { %s2261_s24 = scalar_lea.vmem %s2512_s3, %s1725_s11  ;;  %s383_s22 = scalar_lea.vmem %s2513_s4, %s2242_s21 }
  0x1f   : > { %s2270_s15 = scalar_lea.vmem %s2514_s5, %s1725_s11  ;;  %s2275_s29 = scalar_lea.vmem %s2515_s6, %s1724_s18 }
  0x20   : > { %398 = sbr.rel (%p1681_p0) target bundleno = 44 (0x2c), region = 52 }
  0x25   : > { %v399_v0 = vld [vmem:[%s367_s10] sm:$0xff]  ;;  %vm400_vm0 = vcmask 261120   ;;  %v402_v1 = vlaneseq  ;;  %vm408_vm1 = vcmask 64512   ;;  %v2118_v4 = vmov -1e+30  }
  0x26   : > { %401 = vst.msk [vmem:[#allocation2] sm:$0xff] %vm400_vm0, %v399_v0 }
  0x27   : > { %v403_v2 = vshrl.u32 %v402_v1, 7  ;;  %v405_v3 = vand.u32 127, %v402_v1 }
  0x29   : > { %vm406_vm2 = vcmp.le.s32.totalorder %v405_v3, %v403_v2 }
  0x2a   : > { %v407_v5 = vsel %vm406_vm2, 0.0, %v2118_v4 }
  0x2b   : > { %409 = vst.msk [vmem:[#allocation3] sm:$0xff] %vm408_vm1, %v407_v5 }
  0x2c PF: > { %vm412_vm3 = vcmask 261120   ;;  %v1984_v13 = vld [vmem:[%s2256_s17 + $0x8] sm:$0xff]   ;;  %v1985_v14 = vld [vmem:[%s2256_s17 + $0x38] sm:$0xff]   ;;  %v2119_v15 = vmov 0.0   ;;  %v1986_v16 = vld [vmem:[%s2256_s17] sm:$0xff]   ;;  %vm2120_vm4 = vmmov 0   ;;  %s2537_s11 = scalar_lea.vmem %s2510_s1, %s2242_s21 }
  0x2d   : > { %v2279_v6 = vld [vmem:[#allocation2] sm:$0xff]  ;;  %1776 = vmatprep.subr.bf16.mxu0 %v2119_v15  ;;  %1800 = vmatprep.subr.bf16.mxu1 %v2119_v15  ;;  %v1987_v17 = vld [vmem:[%s2256_s17 + $0x30] sm:$0xff]   ;;  %v1988_v25 = vld [vmem:[%s2256_s17 + $0x18] sm:$0xff]   ;;  %s2121_s12 = smov 120   ;;  %vm669_vm5 = vcmask 64512   ;;  %s2122_s14 = smov 112  }
  0x2e   : > { %v413_v7 = vsel %vm412_vm3, %v2279_v6, 0.0  ;;  %1777 = vmatpush3.bf16.msra.mxu0 %v1984_v13  ;;  %1801 = vmatpush3.bf16.msra.mxu1 %v1985_v14  ;;  %v1682_v22 = vld [vmem:[%s2537_s11] ss:$0 sm:$0xff]  ;;  %v1989_v27 = vld [vmem:[%s2256_s17 + $0x10] sm:$0xff]   ;;  %v1990_v28 = vld [vmem:[%s2256_s17 + $0x28] sm:$0xff]   ;;  %vm925_vm6 = vcmask 1043456  }
  0x2f   : > { %414 = vadd.xlane.f32.xlu0 %v413_v7  ;;  %1778 = vmatprep.subr.bf16.mxu0 %v2119_v15  ;;  %v1991_v29 = vld [vmem:[%s2256_s17 + $0x20] sm:$0xff]   ;;  %p1719_p1 = scmp.ne.s32.totalorder %s2100_s27, 1 }
  0x30   : > { %1802 = vmatprep.subr.bf16.mxu1 %v2119_v15  ;;  %1780 = vmatprep.mubr.msk.bf16.mxu0 %vm2120_vm4, %v2119_v15 }
  0x31   : > { %1804 = vmatprep.mubr.msk.bf16.mxu1 %vm2120_vm4, %v2119_v15 }
  0x32   : > { %1779 = vmatpush3.bf16.msra.mxu0 %v1986_v16  ;;  %1803 = vmatpush3.bf16.msra.mxu1 %v1987_v17  ;;  %v867_v59 = vld [vmem:[#allocation3] sm:$0xff] }
  0x33   : > { %1784 = vmatprep.subr.bf16.mxu0 %v2119_v15  ;;  %1814 = vmatprep.subr.bf16.mxu1 %v2119_v15 }
  0xb8   : > { %v415_v8 = vpop.xlane.xlu0 %414 }
  0xb9   : > { %v417_v9 = vmul.f32 0.03125, %v415_v8 }
  0xbb   : > { %v418_v10 = vsub.f32 %v2279_v6, %v417_v9 }
  0xbd   : > { %v419_v11 = vmul.f32 %v418_v10, %v418_v10 }
  0xbf   : > { %v420_v12 = vsel %vm412_vm3, %v419_v11, 0.0 }
  0xc0   : > { %421 = vadd.xlane.f32.xlu0 %v420_v12 }
 0x149   : > { %v422_v18 = vpop.xlane.xlu0 %421 }
 0x14a   : > { %v423_v19 = vmul.f32 0.03125, %v422_v18 }
 0x14c   : > { %v424_v20 = vadd.f32 1e-05, %v423_v19 }
 0x14e   : > { %2002 = vrsqrt.f32 %v424_v20 }
 0x15b   : > { %v2003_v21 = vpop.eup %2002 }
 0x15c   : > { %v426_v23 = vmul.f32 %v2003_v21, %v418_v10 }
 0x15e   : > { %v433_v24 = vmul.f32 %v1682_v22, %v426_v23 }
 0x160   : > { %v434_v26 = vpack.c.bf16 %v433_v24, %v433_v24 }
 0x162   : > { %1781 = vmatmul.mubr.msk.bf16.vlgmr.msra.gmra.mxu0 %vm412_vm3, %v434_v26  ;;  %1805 = vmatmul.mubr.msk.bf16.vlgmr.msra.gmra.mxu1 %vm412_vm3, %v434_v26 }
 0x163   : > { %1785 = vmatpush3.bf16.msra.mxu0 %v1988_v25  ;;  %1788 = vmatprep.mubr.msk.bf16.mxu0 %vm2120_vm4, %v2119_v15 }
 0x164   : > { %1786 = vmatprep.subr.bf16.mxu0 %v2119_v15  ;;  %1816 = vmatprep.mubr.msk.bf16.mxu1 %vm2120_vm4, %v2119_v15 }
 0x167   : > { %1787 = vmatpush3.bf16.msra.mxu0 %v1989_v27 }
 0x168   : > { %1792 = vmatprep.subr.bf16.mxu0 %v2119_v15 }
 0x16a   : > { %1789 = vmatmul.mubr.msk.bf16.vlgmr.msra.gmra.mxu0 %vm412_vm3, %v434_v26 }
 0x16b   : > { %1793 = vmatpush3.bf16.msra.mxu0 %v1990_v28  ;;  %1796 = vmatprep.mubr.msk.bf16.mxu0 %vm2120_vm4, %v2119_v15 }
 0x16c   : > { %1794 = vmatprep.subr.bf16.mxu0 %v2119_v15 }
 0x16f   : > { %1795 = vmatpush3.bf16.msra.mxu0 %v1991_v29 }
 0x170   : > { %1808 = vmatprep.subr.bf16.mxu0 %v2119_v15 }
 0x172   : > { %1797 = vmatmul.mubr.msk.bf16.vlgmr.msra.gmra.mxu0 %vm412_vm3, %v434_v26 }
 0x173   : > { %1810 = vmatprep.mubr.msk.bf16.mxu0 %vm2120_vm4, %v2119_v15 }
 0x222   : > { %v500_v30 = vpop.f32.mrf.mxu0  ;;  %v656_v31 = vpop.f32.mrf.mxu1 }
 0x223   : > { %v2324_v32 = vpack.c.bf16 %v500_v30, %v500_v30  ;;  %v2330_v43 = vpack.c.bf16 %v656_v31, %v656_v31 }
 0x224   : > { %v1782_v33 = vpop.f32.mrf.mxu0  ;;  %v1806_v34 = vpop.f32.mrf.mxu1 }
 0x225   : > { %667 = vrot.lane.b32.xlu1 %v2324_v32, %s2121_s12 }
 0x226   : > { %v503_v35 = vpop.f32.mrf.mxu0  ;;  %v659_v36 = vpop.f32.mrf.mxu1 }
 0x228   : > { %v1783_v37 = vpop.f32.mrf.mxu0  ;;  %v1807_v38 = vpop.f32.mrf.mxu1 }
 0x22a   : > { %v552_v39 = vpop.f32.mrf.mxu0 }
 0x22b   : > { %v2327_v40 = vpack.c.bf16 %v552_v39, %v552_v39 }
 0x22c   : > { %v1790_v41 = vpop.f32.mrf.mxu0 }
 0x22d   : > { %717 = vrot.lane.b32.xlu1 %v2327_v40, %s2121_s12 }
 0x22e   : > { %v555_v42 = vpop.f32.mrf.mxu0 }
 0x230   : > { %v1791_v44 = vpop.f32.mrf.mxu0 }
 0x231   : > { %815 = vrot.lane.b32.xlu1 %v2330_v43, %s2121_s12 }
 0x232   : > { %v604_v45 = vpop.f32.mrf.mxu0 }
 0x233   : > { %v2333_v46 = vpack.c.bf16 %v604_v45, %v604_v45 }
 0x234   : > { %v1798_v47 = vpop.f32.mrf.mxu0 }
 0x235   : > { %766 = vrot.lane.b32.xlu0 %v2333_v46, %s2121_s12 }
 0x236   : > { %v607_v48 = vpop.f32.mrf.mxu0 }
 0x238   : > { %v1799_v49 = vpop.f32.mrf.mxu0 }
 0x297   : > { %v668_v50 = vpop.permute.xlu1 %667 }
 0x298   : > { %v674_v51 = vsel %vm669_vm5, %v668_v50, 0 }
 0x299   : > { %1809 = vmatpush3.bf16.xpose.msra.mxu0 %v674_v51 }
 0x29a   : > { %1820 = vmatprep.subr.bf16.mxu0 %v2119_v15 }
 0x29f   : > { %v718_v52 = vpop.permute.xlu1 %717 }
 0x2a0   : > { %v723_v53 = vsel %vm669_vm5, %v718_v52, 0  ;;  %1811 = vmatmul.mubr.msk.bf16.vlgmr.msra.gmra.mxu0 %vm669_vm5, %v2324_v32 }
 0x2a1   : > { %1815 = vmatpush3.bf16.xpose.msra.mxu1 %v723_v53  ;;  %1822 = vmatprep.mubr.msk.bf16.mxu0 %vm2120_vm4, %v2119_v15 }
 0x2a2   : > { %1826 = vmatprep.subr.bf16.mxu1 %v2119_v15 }
 0x2a3   : > { %v816_v54 = vpop.permute.xlu1 %815 }
 0x2a4   : > { %v821_v56 = vsel %vm669_vm5, %v816_v54, 0 }
 0x2a7   : > { %v767_v55 = vpop.permute.xlu0 %766 }
 0x2a8   : > { %v772_v57 = vsel %vm669_vm5, %v767_v55, 0  ;;  %1817 = vmatmul.mubr.msk.bf16.vlgmr.msra.gmra.mxu1 %vm669_vm5, %v2327_v40 }
 0x2a9   : > { %1821 = vmatpush3.bf16.xpose.msra.mxu0 %v772_v57  ;;  %1827 = vmatpush3.bf16.xpose.msra.mxu1 %v821_v56 }
 0x2aa   : > { %1828 = vmatprep.mubr.msk.bf16.mxu1 %vm2120_vm4, %v2119_v15  ;;  %1832 = vmatprep.subr.bf16.mxu0 %v2119_v15 }
 0x2ab   : > { %1838 = vmatprep.subr.bf16.mxu1 %v2119_v15 }
 0x2b0   : > { %1823 = vmatmul.mubr.msk.bf16.vlgmr.msra.gmra.mxu0 %vm669_vm5, %v2333_v46  ;;  %1829 = vmatmul.mubr.msk.bf16.vlgmr.msra.gmra.mxu1 %vm669_vm5, %v2330_v43 }
 0x2b1   : > { %1834 = vmatprep.mubr.msk.bf16.mxu0 %vm2120_vm4, %v2119_v15  ;;  %1840 = vmatprep.mubr.msk.bf16.mxu1 %vm2120_vm4, %v2119_v15 }
 0x360   : > { %v710_v58 = vpop.f32.mrf.mxu0 }
 0x361   : > { %v863_v60 = vmul.f32 0.35355338, %v710_v58 }
 0x362   : > { %v1812_v61 = vpop.f32.mrf.mxu0 }
 0x363   : > { %v868_v62 = vadd.f32 %v867_v59, %v863_v60 }
 0x364   : > { %v713_v63 = vpop.f32.mrf.mxu0 }
 0x365   : > { %v872_v0 = vsel %vm669_vm5, %v868_v62, -inf }
 0x366   : > { %873 = vmax.xlane.f32.xlu1 %v872_v0  ;;  %v1813_v1 = vpop.f32.mrf.mxu0 }
 0x368   : > { %v759_v2 = vpop.f32.mrf.mxu1 }
 0x369   : > { %v864_v3 = vmul.f32 0.35355338, %v759_v2 }
 0x36a   : > { %v1818_v4 = vpop.f32.mrf.mxu1 }
 0x36b   : > { %v869_v5 = vadd.f32 %v867_v59, %v864_v3 }
 0x36c   : > { %v762_v7 = vpop.f32.mrf.mxu1 }
 0x36d   : > { %v875_v8 = vsel %vm669_vm5, %v869_v5, -inf }
 0x36e   : > { %v1819_v9 = vpop.f32.mrf.mxu1  ;;  %876 = vmax.xlane.f32.xlu0 %v875_v8  ;;  %v1118_v8 = vld [vmem:[%s2261_s24 + $0x4] sm:$0xf] }
 0x36f   : > { %v1171_v9 = vsel %vm925_vm6, %v1118_v8, 0 }
 0x370   : > { %v808_v10 = vpop.f32.mrf.mxu0  ;;  %v857_v11 = vpop.f32.mrf.mxu1 }
 0x371   : > { %v865_v12 = vmul.f32 0.35355338, %v808_v10  ;;  %v866_v13 = vmul.f32 0.35355338, %v857_v11  ;;  %v1119_v10 = vld [vmem:[%s2261_s24 + $0x8] sm:$0xf] }
 0x372   : > { %v1824_v14 = vpop.f32.mrf.mxu0  ;;  %v1830_v16 = vpop.f32.mrf.mxu1 }
 0x373   : > { %v870_v17 = vadd.f32 %v867_v59, %v865_v12  ;;  %v871_v21 = vadd.f32 %v867_v59, %v866_v13  ;;  %v1217_v13 = vsel %vm925_vm6, %v1119_v10, 0 }
 0x374   : > { %v811_v18 = vpop.f32.mrf.mxu0  ;;  %v860_v19 = vpop.f32.mrf.mxu1 }
 0x375   : > { %v878_v20 = vsel %vm669_vm5, %v870_v17, -inf  ;;  %v881_v24 = vsel %vm669_vm5, %v871_v21, -inf  ;;  %v1120_v18 = vld [vmem:[%s2261_s24 + $0xc] sm:$0xf] }
 0x376   : > { %v1831_v22 = vpop.f32.mrf.mxu1  ;;  %879 = vmax.xlane.f32.xlu1 %v878_v20  ;;  %v1825_v23 = vpop.f32.mrf.mxu0 }
 0x37a   : > { %882 = vmax.xlane.f32.xlu1 %v881_v24 }
 0x384   : > { %920 = vrot.lane.b32.xlu0 %v2324_v32, %s2122_s14 }
 0x38b   : > { %969 = vrot.lane.b32.xlu1 %v2327_v40, %s2122_s14 }
 0x3ef   : > { %v874_v25 = vpop.xlane.xlu1 %873 }
 0x3f0   : > { %v884_v26 = vsub.f32 %v868_v62, %v874_v25 }
 0x3f2   : > { %v888_v27 = vmul.f32 1.442695, %v884_v26 }
 0x3f4   : > { %2004 = vpow2.f32 %v888_v27 }
 0x3f7   : > { %v877_v28 = vpop.xlane.xlu0 %876 }
 0x3f8   : > { %v885_v29 = vsub.f32 %v869_v5, %v877_v28  ;;  %v1117_v5 = vld [vmem:[%s2261_s24] sm:$0xf] }
 0x3f9   : > { %v1125_v7 = vsel %vm925_vm6, %v1117_v5, 0 }
 0x3fa   : > { %v890_v30 = vmul.f32 1.442695, %v885_v29 }
 0x3fb   : > { %v921_v31 = vpop.permute.xlu0 %920 }
 0x3fc   : > { %2006 = vpow2.f32 %v890_v30  ;;  %v927_v33 = vsel %vm925_vm6, %v921_v31, 0 }
 0x3fd   : > { %1833 = vmatpush3.bf16.msra.mxu0 %v927_v33 }
 0x3fe   : > { %1844 = vmatprep.subr.bf16.mxu0 %v2119_v15 }
 0x3ff   : > { %v880_v34 = vpop.xlane.xlu1 %879 }
 0x400   : > { %v886_v32 = vsub.f32 %v870_v17, %v880_v34 }
 0x401   : > { %v2005_v35 = vpop.eup %2004 }
 0x402   : > { %v892_v36 = vmul.f32 1.442695, %v886_v32  ;;  %v896_v37 = vsel %vm669_vm5, %v2005_v35, 0.0 }
 0x403   : > { %897 = vadd.xlane.f32.xlu1 %v896_v37  ;;  %v883_v38 = vpop.xlane.xlu1 %882 }
 0x404   : > { %2008 = vpow2.f32 %v892_v36  ;;  %v887_v39 = vsub.f32 %v871_v21, %v883_v38  ;;  %v1263_v21 = vsel %vm925_vm6, %v1120_v18, 0  ;;  %v2000_v18 = vld [vmem:[%s2275_s29 + $0x8] sm:$0xff]  }
 0x406   : > { %v894_v40 = vmul.f32 1.442695, %v887_v39 }
 0x407   : > { %v970_v41 = vpop.permute.xlu1 %969 }
 0x408   : > { %2010 = vpow2.f32 %v894_v40  ;;  %v975_v42 = vsel %vm925_vm6, %v970_v41, 0 }
 0x409   : > { %v2007_v44 = vpop.eup %2006  ;;  %1839 = vmatpush3.bf16.msra.mxu1 %v975_v42 }
 0x40a   : > { %v899_v45 = vsel %vm669_vm5, %v2007_v44, 0.0  ;;  %1850 = vmatprep.subr.bf16.mxu1 %v2119_v15 }
 0x40b   : > { %900 = vadd.xlane.f32.xlu1 %v899_v45 }
 0x411   : > { %v2009_v47 = vpop.eup %2008 }
 0x412   : > { %v902_v48 = vsel %vm669_vm5, %v2009_v47, 0.0 }
 0x413   : > { %903 = vadd.xlane.f32.xlu0 %v902_v48 }
 0x415   : > { %v2011_v49 = vpop.eup %2010 }
 0x416   : > { %v905_v50 = vsel %vm669_vm5, %v2011_v49, 0.0 }
 0x417   : > { %906 = vadd.xlane.f32.xlu1 %v905_v50 }
 0x428   : > { %1017 = vrot.lane.b32.xlu1 %v2333_v46, %s2122_s14 }
 0x429   : > { %1065 = vrot.lane.b32.xlu0 %v2330_v43, %s2122_s14 }
 0x48c   : > { %v898_v51 = vpop.xlane.xlu1 %897 }
 0x48d   : > { %2012 = vrcp.f32 %v898_v51 }
 0x494   : > { %v901_v52 = vpop.xlane.xlu1 %900 }
 0x495   : > { %2014 = vrcp.f32 %v901_v52 }
 0x49a   : > { %v2013_v53 = vpop.eup %2012 }
 0x49b   : > { %v912_v54 = vmul.f32 %v2013_v53, %v2005_v35 }
 0x49c   : > { %v904_v55 = vpop.xlane.xlu0 %903 }
 0x49d   : > { %2016 = vrcp.f32 %v904_v55  ;;  %v916_v56 = vpack.c.bf16 %v912_v54, %v912_v54 }
 0x49f   : > { %1835 = vmatmul.mubr.msk.bf16.vlgmr.msra.gmra.mxu0 %vm669_vm5, %v916_v56 }
 0x4a0   : > { %v907_v57 = vpop.xlane.xlu1 %906  ;;  %1846 = vmatprep.mubr.msk.bf16.mxu0 %vm2120_vm4, %v2119_v15  ;;  %v1066_v59 = vpop.permute.xlu0 %1065 }
 0x4a1   : > { %2018 = vrcp.f32 %v907_v57  ;;  %v1071_v62 = vsel %vm925_vm6, %v1066_v59, 0 }
 0x4a2   : > { %v2015_v46 = vpop.eup %2014 }
 0x4a3   : > { %v913_v58 = vmul.f32 %v2015_v46, %v2007_v44 }
 0x4a4   : > { %v1018_v43 = vpop.permute.xlu1 %1017 }
 0x4a5   : > { %v1023_v60 = vsel %vm925_vm6, %v1018_v43, 0  ;;  %v917_v61 = vpack.c.bf16 %v913_v58, %v913_v58 }
 0x4a6   : > { %1845 = vmatpush3.bf16.msra.mxu0 %v1023_v60 }
 0x4a7   : > { %1841 = vmatmul.mubr.msk.bf16.vlgmr.msra.gmra.mxu1 %vm669_vm5, %v917_v61  ;;  %1856 = vmatprep.subr.bf16.mxu0 %v2119_v15 }
 0x4a8   : > { %1851 = vmatpush3.bf16.msra.mxu1 %v1071_v62  ;;  %1852 = vmatprep.mubr.msk.bf16.mxu1 %vm2120_vm4, %v2119_v15 }
 0x4a9   : > { %1862 = vmatprep.subr.bf16.mxu1 %v2119_v15 }
 0x4aa   : > { %v2017_v63 = vpop.eup %2016 }
 0x4ab   : > { %v914_v0 = vmul.f32 %v2017_v63, %v2009_v47 }
 0x4ad   : > { %v918_v1 = vpack.c.bf16 %v914_v0, %v914_v0 }
 0x4ae   : > { %v2019_v2 = vpop.eup %2018 }
 0x4af   : > { %1847 = vmatmul.mubr.msk.bf16.vlgmr.msra.gmra.mxu0 %vm669_vm5, %v918_v1  ;;  %v915_v3 = vmul.f32 %v2019_v2, %v2011_v49  ;;  %v1992_v1 = vld [vmem:[%s2270_s15 + $0x8] sm:$0xff]  }
 0x4b0   : > { %1858 = vmatprep.mubr.msk.bf16.mxu0 %vm2120_vm4, %v2119_v15  ;;  %1857 = vmatpush3.bf16.msra.mxu0 %v1125_v7  ;;  %v1707_v7 = vld [vmem:[%s383_s22] ss:$0 sm:$0xff] }
 0x4b1   : > { %v919_v4 = vpack.c.bf16 %v915_v3, %v915_v3  ;;  %1868 = vmatprep.subr.bf16.mxu0 %v2119_v15 }
 0x4b3   : > { %1853 = vmatmul.mubr.msk.bf16.vlgmr.msra.gmra.mxu1 %vm669_vm5, %v919_v4 }
 0x4b4   : > { %1864 = vmatprep.mubr.msk.bf16.mxu1 %vm2120_vm4, %v2119_v15  ;;  %1863 = vmatpush3.bf16.msra.mxu1 %v1171_v9 }
 0x4b5   : > { %1874 = vmatprep.subr.bf16.mxu1 %v2119_v15 }
 0x55f   : > { %v963_v11 = vpop.f32.mrf.mxu0 }
 0x560   : > { %v1113_v12 = vpack.c.bf16 %v963_v11, %v963_v11  ;;  %v1994_v11 = vld [vmem:[%s2275_s29 + $0x38] sm:$0xff]  }
 0x561   : > { %v1836_v14 = vpop.f32.mrf.mxu0 }
 0x562   : > { %1859 = vmatmul.mubr.msk.bf16.vlgmr.msra.gmra.mxu0 %vm669_vm5, %v1113_v12  ;;  %v1995_v12 = vld [vmem:[%s2275_s29 + $0x30] sm:$0xff]   ;;  %v1997_v14 = vld [vmem:[%s2275_s29 + $0x20] sm:$0xff]  }
 0x563   : > { %v966_v16 = vpop.f32.mrf.mxu0  ;;  %1869 = vmatpush3.bf16.msra.mxu0 %v1217_v13  ;;  %1870 = vmatprep.mubr.msk.bf16.mxu0 %vm2120_vm4, %v2119_v15  ;;  %v1996_v13 = vld [vmem:[%s2275_s29 + $0x28] sm:$0xff]  }
 0x564   : > { %1880 = vmatprep.subr.bf16.mxu0 %v2119_v15  ;;  %v1998_v16 = vld [vmem:[%s2275_s29 + $0x18] sm:$0xff]  }
 0x565   : > { %v1837_v17 = vpop.f32.mrf.mxu0 }
 0x566   : > { %v1999_v17 = vld [vmem:[%s2275_s29 + $0x10] sm:$0xff]  }
 0x567   : > { %v1011_v19 = vpop.f32.mrf.mxu1 }
 0x568   : > { %v1114_v20 = vpack.c.bf16 %v1011_v19, %v1011_v19  ;;  %v2001_v19 = vld [vmem:[%s2275_s29] sm:$0xff]  }
 0x569   : > { %v1842_v22 = vpop.f32.mrf.mxu1 }
 0x56a   : > { %1865 = vmatmul.mubr.msk.bf16.vlgmr.msra.gmra.mxu1 %vm669_vm5, %v1114_v20 }
 0x56b   : > { %v1014_v23 = vpop.f32.mrf.mxu1  ;;  %1875 = vmatpush3.bf16.msra.mxu1 %v1263_v21  ;;  %1876 = vmatprep.mubr.msk.bf16.mxu1 %vm2120_vm4, %v2119_v15 }
 0x56c   : > { %1888 = vmatprep.subr.bf16.mxu1 %v2119_v15 }
 0x56d   : > { %v1843_v24 = vpop.f32.mrf.mxu1 }
 0x56f   : > { %v1059_v25 = vpop.f32.mrf.mxu0 }
 0x570   : > { %v1115_v26 = vpack.c.bf16 %v1059_v25, %v1059_v25 }
 0x571   : > { %v1848_v27 = vpop.f32.mrf.mxu0 }
 0x572   : > { %1871 = vmatmul.mubr.msk.bf16.vlgmr.msra.gmra.mxu0 %vm669_vm5, %v1115_v26 }
 0x573   : > { %v1062_v28 = vpop.f32.mrf.mxu0  ;;  %v1107_v29 = vpop.f32.mrf.mxu1  ;;  %1884 = vmatprep.mubr.msk.bf16.mxu0 %vm2120_vm4, %v2119_v15  ;;  %1881 = vmatpush3.bf16.msra.mxu0 %v1992_v1 }
 0x574   : > { %v1116_v30 = vpack.c.bf16 %v1107_v29, %v1107_v29  ;;  %1882 = vmatprep.subr.bf16.mxu0 %v2119_v15 }
 0x575   : > { %v1849_v31 = vpop.f32.mrf.mxu0  ;;  %v1854_v33 = vpop.f32.mrf.mxu1 }
 0x576   : > { %1877 = vmatmul.mubr.msk.bf16.vlgmr.msra.gmra.mxu1 %vm669_vm5, %v1116_v30 }
 0x577   : > { %v1110_v34 = vpop.f32.mrf.mxu1  ;;  %1904 = vmatprep.mubr.msk.bf16.mxu1 %vm2120_vm4, %v2119_v15  ;;  %1889 = vmatpush3.bf16.msra.mxu1 %v1994_v11 }
 0x578   : > { %1890 = vmatprep.subr.bf16.mxu1 %v2119_v15 }
 0x579   : > { %v1855_v32 = vpop.f32.mrf.mxu1 }
 0x57b   : > { %1891 = vmatpush3.bf16.msra.mxu1 %v1995_v12 }
 0x57c   : > { %1892 = vmatprep.subr.bf16.mxu1 %v2119_v15 }
 0x57f   : > { %1893 = vmatpush3.bf16.msra.mxu1 %v1996_v13 }
 0x580   : > { %1894 = vmatprep.subr.bf16.mxu1 %v2119_v15 }
 0x583   : > { %1895 = vmatpush3.bf16.msra.mxu1 %v1997_v14 }
 0x584   : > { %1896 = vmatprep.subr.bf16.mxu1 %v2119_v15 }
 0x587   : > { %1897 = vmatpush3.bf16.msra.mxu1 %v1998_v16 }
 0x588   : > { %1898 = vmatprep.subr.bf16.mxu1 %v2119_v15 }
 0x58b   : > { %1899 = vmatpush3.bf16.msra.mxu1 %v1999_v17 }
 0x58c   : > { %1900 = vmatprep.subr.bf16.mxu1 %v2119_v15 }
 0x58f   : > { %1901 = vmatpush3.bf16.msra.mxu1 %v2000_v18 }
 0x590   : > { %1902 = vmatprep.subr.bf16.mxu1 %v2119_v15 }
 0x593   : > { %1903 = vmatpush3.bf16.msra.mxu1 %v2001_v19 }
 0x622   : > { %v1161_v35 = vpop.f32.mrf.mxu0 }
 0x623   : > { %v1305_v47 = vsel %vm412_vm3, %v1161_v35, 0.0 }
 0x624   : > { %v1860_v36 = vpop.f32.mrf.mxu0 }
 0x626   : > { %v1164_v37 = vpop.f32.mrf.mxu0 }
 0x628   : > { %v1861_v38 = vpop.f32.mrf.mxu0 }
 0x62a   : > { %v1207_v39 = vpop.f32.mrf.mxu1 }
 0x62b   : > { %v1306_v44 = vsel %vm412_vm3, %v1207_v39, 0.0 }
 0x62c   : > { %v1866_v40 = vpop.f32.mrf.mxu1  ;;  %v1307_v49 = vadd.f32 %v1306_v44, %v1305_v47 }
 0x62e   : > { %v1210_v41 = vpop.f32.mrf.mxu1 }
 0x630   : > { %v1867_v42 = vpop.f32.mrf.mxu1 }
 0x632   : > { %v1253_v45 = vpop.f32.mrf.mxu0 }
 0x633   : > { %v1308_v48 = vsel %vm412_vm3, %v1253_v45, 0.0 }
 0x634   : > { %v1872_v50 = vpop.f32.mrf.mxu0  ;;  %v1309_v51 = vadd.f32 %v1308_v48, %v1307_v49 }
 0x636   : > { %v1256_v52 = vpop.f32.mrf.mxu0  ;;  %v1299_v53 = vpop.f32.mrf.mxu1 }
 0x637   : > { %v1310_v54 = vsel %vm412_vm3, %v1299_v53, 0.0 }
 0x638   : > { %v1311_v55 = vadd.f32 %v1310_v54, %v1309_v51  ;;  %v1873_v56 = vpop.f32.mrf.mxu0  ;;  %v1878_v57 = vpop.f32.mrf.mxu1 }
 0x63a   : > { %v2425_v46 = vadd.f32 %v1311_v55, %v2279_v6  ;;  %v1302_v58 = vpop.f32.mrf.mxu1  ;;  %v1993_v6 = vld [vmem:[%s2270_s15] sm:$0xff]  }
 0x63b   : > { %1883 = vmatpush3.bf16.msra.mxu0 %v1993_v6 }
 0x63c   : > { %v1879_v59 = vpop.f32.mrf.mxu1  ;;  %v1314_v43 = vsel %vm412_vm3, %v2425_v46, 0.0 }
 0x63d   : > { %1315 = vadd.xlane.f32.xlu1 %v1314_v43 }
 0x6c6   : > { %v1316_v60 = vpop.xlane.xlu1 %1315 }
 0x6c7   : > { %v1317_v61 = vmul.f32 0.03125, %v1316_v60 }
 0x6c9   : > { %v1318_v62 = vsub.f32 %v2425_v46, %v1317_v61 }
 0x6cb   : > { %v1319_v63 = vmul.f32 %v1318_v62, %v1318_v62 }
 0x6cd   : > { %v1320_v0 = vsel %vm412_vm3, %v1319_v63, 0.0 }
 0x6ce   : > { %1321 = vadd.xlane.f32.xlu0 %v1320_v0 }
 0x757   : > { %v1322_v2 = vpop.xlane.xlu0 %1321 }
 0x758   : > { %v1323_v3 = vmul.f32 0.03125, %v1322_v2 }
 0x75a   : > { %v1324_v4 = vadd.f32 1e-05, %v1323_v3 }
 0x75c   : > { %2020 = vrsqrt.f32 %v1324_v4 }
 0x769   : > { %v2021_v5 = vpop.eup %2020 }
 0x76a   : > { %v1326_v8 = vmul.f32 %v2021_v5, %v1318_v62 }
 0x76c   : > { %v1333_v9 = vmul.f32 %v1707_v7, %v1326_v8 }
 0x76e   : > { %v1334_v10 = vpack.c.bf16 %v1333_v9, %v1333_v9 }
 0x770   : > { %1885 = vmatmul.mubr.msk.bf16.vlgmr.msra.gmra.mxu0 %vm412_vm3, %v1334_v10 }
 0x830   : > { %v1388_v20 = vpop.f32.mrf.mxu0 }
 0x831   : > { %v1395_v21 = vmul.f32 0.044715, %v1388_v20  ;;  %v1394_v30 = vmul.f32 0.5, %v1388_v20 }
 0x832   : > { %v1886_v22 = vpop.f32.mrf.mxu0 }
 0x833   : > { %v1396_v23 = vmul.f32 %v1395_v21, %v1388_v20 }
 0x834   : > { %v1391_v24 = vpop.f32.mrf.mxu0 }
 0x835   : > { %v1397_v25 = vmul.f32 %v1396_v23, %v1388_v20 }
 0x836   : > { %v1887_v26 = vpop.f32.mrf.mxu0 }
 0x837   : > { %v1398_v27 = vadd.f32 %v1397_v25, %v1388_v20 }
 0x839   : > { %v1399_v28 = vmul.f32 0.7978846, %v1398_v27 }
 0x83b   : > { %2022 = vtanh.f32 %v1399_v28 }
 0x848   : > { %v2023_v29 = vpop.eup %2022 }
 0x849   : > { %v1401_v31 = vadd.f32 1.0, %v2023_v29 }
 0x84b   : > { %v1402_v33 = vmul.f32 %v1401_v31, %v1394_v30 }
 0x84d   : > { %v1403_v34 = vpack.c.bf16 %v1402_v33, %v1402_v33 }
 0x84f   : > { %1905 = vmatmul.mubr.bf16.vlgmr.msra.gmra.mxu1 %v1403_v34 }
 0x90f   : > { %v1502_v32 = vpop.f32.mrf.mxu1 }
 0x910   : > { %v1508_v15 = vadd.f32 %v1502_v32, %v2425_v46 }
 0x911   : > { %v1906_v35 = vpop.f32.mrf.mxu1  ;;  %1513 = sbr.rel (%p1719_p1) target bundleno = 2331 (0x91b), region = 56 }
 0x912   : > { %1509 = vst.msk [vmem:[#allocation2] sm:$0xff] %vm412_vm3, %v1508_v15 }
 0x913   : > { %v1505_v36 = vpop.f32.mrf.mxu1 }
 0x915   : > { %v1907_v37 = vpop.f32.mrf.mxu1 }
 0x919   : > { %v1514_v38 = vld [vmem:[#allocation2] sm:$0xff] }
 0x91a   : > { %1515 = vst.msk [vmem:[%s363_s30] sm:$0xff] %vm412_vm3, %v1514_v38 }
 0x91b PF: > { %s1721_s18 = sshll.u32 %s2104_s28, 7  ;;  %s1530_s22 = sshll.u32 %s363_s30, 4  ;;  %s1531_s22 = int_to_ptr.vmem [resolvable:$true] %s1530_s22 }
 0x91c   : > { %s1528_s20 = scalar_lea.hbm %s2516_s7, %s1721_s18  ;;  %s2538_s27 = sand.u32 1, %s2092_s25  }
 0x91d   : > { %s1517_s23 = scalar_lea.sflag [#allocation5], %s2538_s27  ;;  %s2024_s9 = scalar_lea.vmem %s1531_s22, 128 }
 0x91e   : > { %p2025_p2 = scmp.ne.s32.totalorder %s1531_s22, %s2024_s9  ;;  %s2123_s15 = smov [#allocation4]  }
 0x91f   : > { %s2028_s16 = sshll.u32 %s2123_s15, 4  ;;  %s2029_s16 = int_to_ptr.vmem [resolvable:$false] %s2028_s16 }
 0x920   : > { %p2026_p4 = pnand %p2025_p2, %p2213_p3  ;;  %s2030_s29 = scalar_lea.vmem %s2029_s16, 256 }
 0x921   : > { %p2031_p6 = scmp.lt.s32.totalorder %s1531_s22, %s2029_s16  ;;  %p2032_p7 = scmp.lt.s32.totalorder %s2030_s29, %s2024_s9 }
 0x922   : > { %p2027_p5 = pneg %p2026_p4 }
 0x923   : > { %p2033_p8 = por %p2032_p7, %p2031_p6 }
 0x925   : > { %p2034_p10 = pnand %p2033_p8, %p2027_p5 }
 0x927   : > { %2037 = shalt.err (!%p2034_p10)
}
 0x928   : > { %s2038_s28 = scalar_lea.hbm %s1528_s20, 128  ;;  %s2042_s26 = scalar_lea.hbm %s2516_s7, 256 }
 0x929   : > { %p2039_p11 = scmp.ne.s32.totalorder %s1528_s20, %s2038_s28  ;;  %p2043_p0 = scmp.lt.s32.totalorder %s1528_s20, %s2516_s7 }
 0x92a   : > { %p2044_p1 = scmp.lt.s32.totalorder %s2042_s26, %s2038_s28 }
 0x92b   : > { %p2040_p12 = pnand %p2039_p11, %p2213_p3 }
 0x92c   : > { %p2045_p2 = por %p2044_p1, %p2043_p0 }
 0x92d   : > { %p2041_p13 = pneg %p2040_p12 }
 0x92f   : > { %p2046_p4 = pnand %p2045_p2, %p2041_p13 }
 0x931   : > { %2049 = shalt.err (!%p2046_p4)
}
 0x932   : > { %1908 = dma.vmem_to_hbm [thread:$0]  (%p2213_p3), %s1531_s22, 128, %s1528_s20, %s1517_s23  }
 0x933 PF: > { %s2539_s12 = sld [smem:[#allocation11_spill]] }
 0x934   : > { %s2540_s14 = sld [smem:[#allocation7_spill]] }
 0x939   : > { %p1914_p5 = scmp.ge.s32.totalorder %s2539_s12, 2 }
 0x93a   : > { %s1542_s17 = sand.u32 1, %s2540_s14  }
 0x93b   : > { %p1911_p6 = pnand %p1914_p5, %p2223_p9  ;;  %s1543_s18 = scalar_lea.sflag [#allocation5], %s1542_s17 }
 0x93d   : > { %p1912_p7 = pneg %p1911_p6 }
 0x93f   : > { %2083 = dma.done.wait (%p1912_p7), %s1543_s18, 128  }
 0x940   : > { %2085 = vsyncadd (%p1912_p7), %s1543_s18, 4294967168  ;;  %s20_s8 = sadd.s32 1, %s2539_s12   ;;  %s2542_s21 = sld [smem:[#allocation8_spill]] }
 0x941   : > { %p17_p8 = scmp.ge.s32.totalorder %s20_s8, 6   ;;  %s2543_s26 = sld [smem:[#allocation15_spill]] }
 0x942   : > { %s2544_s27 = sld [smem:[#allocation9_spill]]  ;;  %s2548_s24 = smov %s2092_s25 }
 0x943   : > { %s2545_s28 = sld [smem:[#allocation10_spill]]  ;;  %19 = sbr.rel (!%p17_p8) target bundleno = 5 (0x5), region = 109 }
 0x944   : > { %s2546_s29 = sld [smem:[#allocation12_spill]] }
 0x945   : > { %s2547_s30 = sld [smem:[#allocation13_spill]] }
 0x946   : > { %s2549_s25 = smov %s2542_s21 }
 0x948   :  { %1548 = vsyncpa [#allocation5], 1 }
 0x949   :  { %1550 = vsyncpa [#allocation5 + $0x1], 1 }

</bundles_post_ra>
